<compile_context>
chip_gen: v7x
topology: tpu7x:2x2x1
jax: 0.10.0
libtpu: 0.0.40
codegen_flags: <defaults>
</compile_context>

<pallas_src>
import jax
import jax.numpy as jnp
from jax.experimental import pallas as pl
from jax.experimental.pallas import tpu as pltpu


def _round_up(x, m):
    return ((x + m - 1) // m) * m


def _chip_config():
    """Generation-aware (vmem_tile_budget, vmem_limit, tensorcores_per_chip)."""
    vmem_cap = None
    try:
        vmem_cap = int(pltpu.get_tpu_info().vmem_capacity_bytes)
    except Exception:
        vmem_cap = None
    kind = ""
    try:
        kind = jax.devices()[0].device_kind.lower()
    except Exception:
        pass
    if vmem_cap is None:
        vmem_cap = (64 << 20) if "v7" in kind else (128 << 20)
    # v7x: 2 TensorCores per chip, 64 MiB VMEM per core.  v5e/v6e: 1 TC, 128 MiB.
    two_tc = ("v7" in kind) or (vmem_cap <= (64 << 20))
    if two_tc:
        return min(40 << 20, int(vmem_cap * 0.65)), min(48 << 20, int(vmem_cap * 0.8)), 2
    return min(80 << 20, int(vmem_cap * 0.65)), min(100 << 20, int(vmem_cap * 0.8)), 1


def _make_kernel(batch_size, tb, tiles_per_split, need_mask, num_classes,
                 in_kernel_gather):
    def kernel(*refs):
        if in_kernel_gather:
            feat_ref, tgt_ref, cent_ref, out_ref, acc_ref = refs
        else:
            feat_ref, gath_ref, out_ref, acc_ref = refs

        c = pl.program_id(0)   # batch half (a TensorCore on v7x; size 1 elsewhere)
        i = pl.program_id(1)   # batch tile within the half (sequential reduction)

        # NOTE: with CORE_PARALLEL on v7x each TensorCore has private VMEM, so
        # each core gets its own acc_ref instance and runs its own full i-loop;
        # the i==0 reset / i==last finalize below is therefore per-core-correct.
        @pl.when(i == 0)
        def _():
            acc_ref[...] = jnp.zeros_like(acc_ref)

        if in_kernel_gather:
            # In-kernel gather on the MXU: one_hot(target) @ centers (exact in
            # f32: each one-hot row selects a single centers row).  Out-of-range
            # labels give an all-zero row (PyTorch index_select would raise).
            tgt = tgt_ref[...]                                             # (tb, 1) i32
            cls = jax.lax.broadcasted_iota(jnp.int32, (tb, num_classes), 1)
            one_hot = (tgt == cls).astype(jnp.float32)                     # (tb, C)
            gathered = jnp.dot(one_hot, cent_ref[...].astype(jnp.float32),
                               preferred_element_type=jnp.float32)         # (tb, D)
        else:
            gathered = gath_ref[...].astype(jnp.float32)

        diff = gathered - feat_ref[...].astype(jnp.float32)
        sq = diff * diff

        if need_mask:
            # Unclamped tile index: covers both the genuine partial last tile
            # and fully-duplicated clamped tiles of an odd 2-way split.
            tile = c * tiles_per_split + i
            has_pad = (tile + 1) * tb > batch_size

            @pl.when(has_pad)
            def _():
                row = tile * tb + jax.lax.broadcasted_iota(jnp.int32, (tb, 1), 0)
                acc_ref[...] += jnp.sum(jnp.where(row < batch_size, sq, 0.0),
                                        axis=0, keepdims=True)

            @pl.when(jnp.logical_not(has_pad))
            def _():
                acc_ref[...] += jnp.sum(sq, axis=0, keepdims=True)
        else:
            acc_ref[...] += jnp.sum(sq, axis=0, keepdims=True)

        @pl.when(i == pl.num_programs(1) - 1)
        def _():
            out_ref[...] = jnp.broadcast_to(jnp.sum(acc_ref[...]), out_ref.shape)

    return kernel


def center_loss(feat, target, centers, lamda, *,
                max_batch_tile=None,
                tile_bytes_target=8 * 1024 * 1024,
                gather_in_kernel=None):
    """Pallas implementation of CenterLoss.forward.

    feat:    (B, ...) float array (flattened to (B, feat_dim) like .view(B, -1))
    target:  (B,) int class indices
    centers: (num_classes, feat_dim) float parameter
    """
    batch_size = feat.shape[0]
    feat2d = feat.reshape(batch_size, -1)
    feat_dim = feat2d.shape[1]
    num_classes = centers.shape[0]
    assert centers.shape[1] == feat_dim, "feat_dim mismatch with centers"

    vmem_budget, vmem_limit, num_cores = _chip_config()

    feat_item = jnp.dtype(feat2d.dtype).itemsize
    cent_item = jnp.dtype(centers.dtype).itemsize
    sub = {4: 8, 2: 16, 1: 32}.get(max(feat_item, cent_item), 8)

    # --- gather-mode selection ------------------------------------------------
    # Resident centers = (conservatively) 2 pipeline buffers + an f32 cast temp.
    centers_resident_bytes = (2 * num_classes * feat_dim * cent_item
                              + num_classes * feat_dim * 4)
    if gather_in_kernel is None:
        gather_in_kernel = (centers_resident_bytes <= vmem_budget // 3
                            and num_classes <= 4096)
    else:
        gather_in_kernel = bool(gather_in_kernel) and (
            centers_resident_bytes <= vmem_budget // 2)

    def vmem_need(tb):
        need = 2 * tb * feat_dim * feat_item       # feat double-buffer
        need += 2 * tb * feat_dim * 4              # diff/sq f32 temporaries
        if gather_in_kernel:
            need += 2 * tb * 128 * 4               # (tb,1) i32 target (lane-padded)
            need += tb * num_classes * 4           # one_hot f32 temp
            need += tb * feat_dim * 4              # gathered (MXU result) temp
            need += centers_resident_bytes         # resident centers table
        else:
            need += 2 * tb * feat_dim * cent_item  # streamed gathered tiles
        return need

    # --- batch-tile sizing: bytes target, not a row cap ------------------------
    tb = max(sub, tile_bytes_target // max(1, feat_dim * feat_item))
    if max_batch_tile is not None:
        tb = min(tb, max_batch_tile)
    tb = min(_round_up(tb, sub), _round_up(batch_size, sub))
    while tb > sub and vmem_need(tb) > vmem_budget:
        tb = _round_up(tb // 2, sub)
    if vmem_need(tb) > vmem_budget:
        # TODO(synk): also tile the feature axis when feat_dim alone blows the
        # VMEM budget at tb == sub; fail loudly instead of OOM-ing in VMEM.
        raise ValueError(
            f"feat_dim={feat_dim} too large for a single row-block within the "
            f"{vmem_budget >> 20} MiB VMEM budget; feature-axis tiling not "
            "implemented.")

    total_tiles = pl.cdiv(batch_size, tb)
    # 2-way batch split only where there are two TensorCores to run it (v7x).
    num_splits = 2 if (num_cores >= 2 and total_tiles >= 2) else 1
    tiles_per_split = pl.cdiv(total_tiles, num_splits)
    need_mask = (num_splits * tiles_per_split * tb) != batch_size

    def in_map(c, i):
        t = c * tiles_per_split + i
        if num_splits > 1:
            # Clamp the (fully masked) duplicated tile of an odd 2-way split.
            t = jnp.minimum(t, total_tiles - 1)
        return (t, 0)

    out_spec = pl.BlockSpec((1, 8, 128), lambda c, i: (c, 0, 0))
    out_shape = jax.ShapeDtypeStruct((num_splits, 8, 128), jnp.float32)
    scratch = [pltpu.VMEM((1, feat_dim), jnp.float32)]
    dim_sem = ((pltpu.CORE_PARALLEL, pltpu.ARBITRARY) if num_splits > 1
               else (pltpu.ARBITRARY, pltpu.ARBITRARY))

    kernel = _make_kernel(batch_size, tb, tiles_per_split, need_mask,
                          num_classes, gather_in_kernel)

    if gather_in_kernel:
        target2d = target.astype(jnp.int32).reshape(batch_size, 1)
        # NOTE: the (B,1) int32 slab costs <=512 padded bytes/row of HBM reads,
        # far below the old B*D gathered round trip.
        grid_spec = pltpu.PrefetchScalarGridSpec(
            num_scalar_prefetch=0,
            grid=(num_splits, tiles_per_split),
            in_specs=[
                pl.BlockSpec((tb, feat_dim), in_map),                   # feat tile
                pl.BlockSpec((tb, 1), in_map),                          # target tile
                pl.BlockSpec((num_classes, feat_dim), lambda c, i: (0, 0)),  # resident centers
            ],
            out_specs=out_spec,
            scratch_shapes=scratch,
        )
        partials = pl.pallas_call(
            kernel,
            out_shape=out_shape,
            grid_spec=grid_spec,
            compiler_params=pltpu.CompilerParams(
                dimension_semantics=dim_sem,
                vmem_limit_bytes=vmem_limit),
        )(feat2d, target2d, centers)
    else:
        # Fallback for very large centers tables: gather with XLA and stream
        # dense tiles.  allow_input_fusion lets XLA fuse the gather into the
        # Pallas operand instead of materializing it in HBM.
        gathered = jnp.take(centers, target.astype(jnp.int32), axis=0)
        grid_spec = pltpu.PrefetchScalarGridSpec(
            num_scalar_prefetch=0,
            grid=(num_splits, tiles_per_split),
            in_specs=[
                pl.BlockSpec((tb, feat_dim), in_map),   # feat tile
                pl.BlockSpec((tb, feat_dim), in_map),   # gathered centers tile
            ],
            out_specs=out_spec,
            scratch_shapes=scratch,
        )
        partials = pl.pallas_call(
            kernel,
            out_shape=out_shape,
            grid_spec=grid_spec,
            compiler_params=pltpu.CompilerParams(
                dimension_semantics=dim_sem,
                vmem_limit_bytes=vmem_limit,
                allow_input_fusion=[False, True]),
        )(feat2d, gathered)

    scale = jnp.float32(lamda) / 2.0 / jnp.float32(batch_size)
    return jnp.sum(partials[:, 0, 0]) * scale


if __name__ == "__main__":
    # Deterministic parameter / input construction (no checkpoint loading).
    num_classes = 16
    feat_dim = 128
    lamda = 0.5

    key = jax.random.PRNGKey(0)
    k_centers, k_feat1, k_tgt1, k_feat2, k_tgt2 = jax.random.split(key, 5)

    centers = jax.random.normal(k_centers, (num_classes, feat_dim), dtype=jnp.float32)

    def reference(feat, target):
        b = feat.shape[0]
        diff = centers[target] - feat.reshape(b, -1)
        return lamda * jnp.sum(diff ** 2) / 2.0 / b

    # Case 1: batch not a multiple of the sublane tile -> partial-tile row mask
    # on the in-kernel (MXU one-hot) gather path.
    b1 = 10
    feat1 = jax.random.normal(k_feat1, (b1, feat_dim), dtype=jnp.float32)
    tgt1 = jax.random.randint(k_tgt1, (b1,), 0, num_classes, dtype=jnp.int32)
    loss1 = jax.block_until_ready(center_loss(feat1, tgt1, centers, lamda))
    ref1 = reference(feat1, tgt1)
    assert jnp.allclose(loss1, ref1, rtol=1e-5, atol=1e-5), (loss1, ref1)

    # Case 2: forced small tile -> multi-tile accumulation (and on 2-TC chips
    # the CORE_PARALLEL split with a clamped, fully-masked duplicate tile).
    b2 = 20
    feat2 = jax.random.normal(k_feat2, (b2, feat_dim), dtype=jnp.float32)
    tgt2 = jax.random.randint(k_tgt2, (b2,), 0, num_classes, dtype=jnp.int32)
    loss2 = jax.block_until_ready(
        center_loss(feat2, tgt2, centers, lamda, max_batch_tile=8))
    ref2 = reference(feat2, tgt2)
    assert jnp.allclose(loss2, ref2, rtol=1e-5, atol=1e-5), (loss2, ref2)

    # Case 3: force the streamed-gather fallback (the large-num_classes path).
    loss3 = jax.block_until_ready(
        center_loss(feat2, tgt2, centers, lamda, max_batch_tile=8,
                    gather_in_kernel=False))
    assert jnp.allclose(loss3, ref2, rtol=1e-5, atol=1e-5), (loss3, ref2)

    print("KERNEL_OK")
</pallas_src>

<mosaic_0001>
module attributes {stable_mosaic.version = 11 : i64} {
  func.func @kernel(%arg0: i32, %arg1: i32, %arg2: memref<16x128xf32, #tpu.memory_space<vmem>>, %arg3: memref<16x1xi32, #tpu.memory_space<vmem>>, %arg4: memref<16x128xf32, #tpu.memory_space<vmem>>, %arg5: memref<1x8x128xf32, #tpu.memory_space<vmem>>, %arg6: memref<1x128xf32, #tpu.memory_space<vmem>>) attributes {dimension_semantics = [#tpu.dimension_semantics<arbitrary>, #tpu.dimension_semantics<arbitrary>], iteration_bounds = array<i64: 1, 1>, scalar_prefetch = 0 : i64, scratch_operands = 1 : i64, tpu.core_type = #tpu.core_type<tc>, window_params = [{transform_indices = @transform_0, window_bounds = array<i64: 16, 128>}, {transform_indices = @transform_1, window_bounds = array<i64: 16, 1>}, {pipeline_mode = #tpu.pipeline_mode<synchronous>, transform_indices = @transform_2, window_bounds = array<i64: 16, 128>}, {transform_indices = @transform_3, window_bounds = array<i64: 1, 8, 128>}]} {
    %c0_i32 = arith.constant 0 : i32
    %0 = arith.cmpi eq, %arg1, %c0_i32 : i32
    %1 = arith.extui %0 : i1 to i32
    %c0_i32_0 = arith.constant 0 : i32
    %2 = arith.cmpi ne, %1, %c0_i32_0 : i32
    scf.if %2 {
      %cst_11 = arith.constant 0.000000e+00 : f32
      %27 = vector.broadcast %cst_11 : f32 to vector<1x128xf32>
      %c0_12 = arith.constant 0 : index
      %c0_13 = arith.constant 0 : index
      %28 = vector.load %arg6[%c0_12, %c0_13] : memref<1x128xf32, #tpu.memory_space<vmem>>, vector<1x128xf32>
      tpu.vector_store %arg6[%c0_12, %c0_13], %27 {strides = array<i32>} : memref<1x128xf32, #tpu.memory_space<vmem>>, vector<1x128xf32>,
    } else {
    }
    %c0 = arith.constant 0 : index
    %c0_1 = arith.constant 0 : index
    %3 = vector.load %arg3[%c0, %c0_1] : memref<16x1xi32, #tpu.memory_space<vmem>>, vector<16x1xi32>
    %4 = tpu.iota {dimensions = array<i32: 1>} : vector<16x16xi32>
    %5 = vector.broadcast %3 : vector<16x1xi32> to vector<16x16xi32>
    %6 = arith.cmpi eq, %5, %4 : vector<16x16xi32>
    %7 = arith.extui %6 : vector<16x16xi1> to vector<16x16xi32>
    %8 = arith.sitofp %7 : vector<16x16xi32> to vector<16x16xf32>
    %c0_2 = arith.constant 0 : index
    %c0_3 = arith.constant 0 : index
    %9 = vector.load %arg4[%c0_2, %c0_3] : memref<16x128xf32, #tpu.memory_space<vmem>>, vector<16x128xf32>
    %cst = arith.constant dense<0.000000e+00> : vector<16x128xf32>
    %10 = tpu.matmul %8, %9, %cst {dimension_numbers = #tpu.dot_dimension_numbers<[1], [0], [0], [1], [0, 0, 1, 1], [], []>} : vector<16x16xf32>, vector<16x128xf32>, vector<16x128xf32> -> vector<16x128xf32>
    %c0_4 = arith.constant 0 : index
    %c0_5 = arith.constant 0 : index
    %11 = vector.load %arg2[%c0_4, %c0_5] : memref<16x128xf32, #tpu.memory_space<vmem>>, vector<16x128xf32>
    %12 = arith.subf %10, %11 : vector<16x128xf32>
    %13 = arith.mulf %12, %12 : vector<16x128xf32>
    %c1_i32 = arith.constant 1 : i32
    %14 = arith.muli %arg0, %c1_i32 : i32
    %15 = arith.addi %14, %arg1 : i32
    %c1_i32_6 = arith.constant 1 : i32
    %16 = arith.addi %15, %c1_i32_6 : i32
    %c16_i32 = arith.constant 16 : i32
    %17 = arith.muli %16, %c16_i32 : i32
    %c10_i32 = arith.constant 10 : i32
    %18 = arith.cmpi sgt, %17, %c10_i32 : i32
    %19 = arith.extui %18 : i1 to i32
    %c0_i32_7 = arith.constant 0 : i32
    %20 = arith.cmpi ne, %19, %c0_i32_7 : i32
    scf.if %20 {
      %c16_i32_11 = arith.constant 16 : i32
      %27 = arith.muli %15, %c16_i32_11 : i32
      %28 = tpu.iota {dimensions = array<i32: 0>} : vector<16x1xi32>
      %29 = vector.broadcast %27 : i32 to vector<16x1xi32>
      %30 = arith.addi %29, %28 : vector<16x1xi32>
      %c0_12 = arith.constant 0 : index
      %c0_13 = arith.constant 0 : index
      %31 = vector.load %arg6[%c0_12, %c0_13] : memref<1x128xf32, #tpu.memory_space<vmem>>, vector<1x128xf32>
      %c10_i32_14 = arith.constant 10 : i32
      %32 = vector.broadcast %c10_i32_14 : i32 to vector<16x1xi32>
      %33 = arith.cmpi slt, %30, %32 : vector<16x1xi32>
      %cst_15 = arith.constant 0.000000e+00 : f32
      %34 = vector.shape_cast %33 : vector<16x1xi1> to vector<16x1xi1>
      %35 = vector.broadcast %34 : vector<16x1xi1> to vector<16x128xi1>
      %36 = vector.broadcast %cst_15 : f32 to vector<16x128xf32>
      %37 = arith.select %35, %13, %36 : vector<16x128xi1>, vector<16x128xf32>
      %cst_16 = arith.constant dense<0.000000e+00> : vector<128xf32>
      %38 = vector.multi_reduction <add>, %37, %cst_16 [0] : vector<16x128xf32> to vector<128xf32>
      %39 = vector.shape_cast %38 : vector<128xf32> to vector<1x128xf32>
      %40 = arith.addf %31, %39 : vector<1x128xf32>
      %c0_17 = arith.constant 0 : index
      %c0_18 = arith.constant 0 : index
      %41 = vector.load %arg6[%c0_17, %c0_18] : memref<1x128xf32, #tpu.memory_space<vmem>>, vector<1x128xf32>
      tpu.vector_store %arg6[%c0_17, %c0_18], %40 {strides = array<i32>} : memref<1x128xf32, #tpu.memory_space<vmem>>, vector<1x128xf32>,
    } else {
    }
    %true = arith.constant true
    %21 = arith.xori %18, %true : i1
    %22 = arith.extui %21 : i1 to i32
    %c0_i32_8 = arith.constant 0 : i32
    %23 = arith.cmpi ne, %22, %c0_i32_8 : i32
    scf.if %23 {
      %c0_11 = arith.constant 0 : index
      %c0_12 = arith.constant 0 : index
      %27 = vector.load %arg6[%c0_11, %c0_12] : memref<1x128xf32, #tpu.memory_space<vmem>>, vector<1x128xf32>
      %cst_13 = arith.constant dense<0.000000e+00> : vector<128xf32>
      %28 = vector.multi_reduction <add>, %13, %cst_13 [0] : vector<16x128xf32> to vector<128xf32>
      %29 = vector.shape_cast %28 : vector<128xf32> to vector<1x128xf32>
      %30 = arith.addf %27, %29 : vector<1x128xf32>
      %c0_14 = arith.constant 0 : index
      %c0_15 = arith.constant 0 : index
      %31 = vector.load %arg6[%c0_14, %c0_15] : memref<1x128xf32, #tpu.memory_space<vmem>>, vector<1x128xf32>
      tpu.vector_store %arg6[%c0_14, %c0_15], %30 {strides = array<i32>} : memref<1x128xf32, #tpu.memory_space<vmem>>, vector<1x128xf32>,
    } else {
    }
    %c0_i32_9 = arith.constant 0 : i32
    %24 = arith.cmpi eq, %arg1, %c0_i32_9 : i32
    %25 = arith.extui %24 : i1 to i32
    %c0_i32_10 = arith.constant 0 : i32
    %26 = arith.cmpi ne, %25, %c0_i32_10 : i32
    scf.if %26 {
      %c0_11 = arith.constant 0 : index
      %c0_12 = arith.constant 0 : index
      %27 = vector.load %arg6[%c0_11, %c0_12] : memref<1x128xf32, #tpu.memory_space<vmem>>, vector<1x128xf32>
      %28 = vector.shape_cast %27 : vector<1x128xf32> to vector<1x1x128xf32>
      %cst_13 = arith.constant dense<0.000000e+00> : vector<1xf32>
      %29 = vector.multi_reduction <add>, %28, %cst_13 [1, 2] : vector<1x1x128xf32> to vector<1xf32>
      %30 = vector.shape_cast %29 : vector<1xf32> to vector<1x1x1xf32>
      %31 = vector.extract %30[0, 0, 0] : f32 from vector<1x1x1xf32>
      %32 = vector.broadcast %31 : f32 to vector<1x8x128xf32>
      %c0_14 = arith.constant 0 : index
      %c0_15 = arith.constant 0 : index
      %c0_16 = arith.constant 0 : index
      %33 = vector.load %arg5[%c0_14, %c0_15, %c0_16] : memref<1x8x128xf32, #tpu.memory_space<vmem>>, vector<1x8x128xf32>
      tpu.vector_store %arg5[%c0_14, %c0_15, %c0_16], %32 {strides = array<i32>} : memref<1x8x128xf32, #tpu.memory_space<vmem>>, vector<1x8x128xf32>,
    } else {
    }
    return
  }
  func.func @transform_0(%arg0: i32, %arg1: i32) -> (i32, i32) {
    %c1_i32 = arith.constant 1 : i32
    %0 = arith.muli %arg0, %c1_i32 : i32
    %1 = arith.addi %0, %arg1 : i32
    %c0_i32 = arith.constant 0 : i32
    %c0_i32_0 = arith.constant 0 : i32
    return %1, %c0_i32 : i32, i32
  }
  func.func @transform_1(%arg0: i32, %arg1: i32) -> (i32, i32) {
    %c1_i32 = arith.constant 1 : i32
    %0 = arith.muli %arg0, %c1_i32 : i32
    %1 = arith.addi %0, %arg1 : i32
    %c0_i32 = arith.constant 0 : i32
    %c0_i32_0 = arith.constant 0 : i32
    return %1, %c0_i32 : i32, i32
  }
  func.func @transform_2(%arg0: i32, %arg1: i32) -> (i32, i32) {
    %c0_i32 = arith.constant 0 : i32
    %c0_i32_0 = arith.constant 0 : i32
    %c0_i32_1 = arith.constant 0 : i32
    return %c0_i32, %c0_i32_0 : i32, i32
  }
  func.func @transform_3(%arg0: i32, %arg1: i32) -> (i32, i32, i32) {
    %c0_i32 = arith.constant 0 : i32
    %c0_i32_0 = arith.constant 0 : i32
    %c0_i32_1 = arith.constant 0 : i32
    return %arg0, %c0_i32, %c0_i32_0 : i32, i32, i32
  }
}

</mosaic_0001>

<bundles_post_ra>
// kernel: tpu_custom_call.1
= control target key start
LH: loop header
LB: loop body
LE: loop exit
PB: predicated region body
PF: predicated region fallthrough
CT: control target
= control target key end

     0   :  { %8 = vsyncpa [#allocation4], 0  ;;  %s474_s0 = inlined_call_operand.hbm [shape: f32[10,128], index: 0, kind: input, shape index: {}]   ;;  %s475_s1 = inlined_call_operand.hbm [shape: s32[10,1], index: 1, kind: input, shape index: {}]   ;;  %s476_s2 = inlined_call_operand.hbm [shape: f32[16,128], index: 2, kind: input, shape index: {}]   ;;  %s477_s3 = inlined_call_operand.hbm [shape: f32[1,8,128], index: 3, kind: output, shape index: {}]  }
   0x1   :  { %9 = vsyncpa [#allocation7], 0 }
   0x2   :  { %10 = vsyncpa [#allocation5], 0  ;;  %s382_s12 = smov [#allocation6]   ;;  %s383_s14 = smov [#allocation3]  }
   0x3   :  { %s36_s13 = sshll.u32 %s382_s12, 4  ;;  %s20_s15 = sshll.u32 %s383_s14, 4  ;;  %s37_s13 = int_to_ptr.vmem [resolvable:$true] %s36_s13  ;;  %s410_s15 = int_to_ptr.vmem [resolvable:$true] %s20_s15 }
   0x4   :  { %s288_s18 = scalar_lea.hbm %s475_s1, 256 }
   0x5   :  { %p289_p0 = scmp.ne.s32.totalorder %s475_s1, %s288_s18  ;;  %p292_p1 = scmp.lt.u32.totalorder %s288_s18, %s475_s1 }
   0x7   :  { %p294_p2 = pnand %p292_p1, %p289_p0 }
   0x9   :  { %297 = shalt.err (!%p294_p2)
}
   0xa   :  { %s298_s23 = scalar_lea.vmem %s37_s13, 256  ;;  %p303_p4 = scmp.lt.s32.totalorder %s37_s13, %s37_s13 }
   0xb   :  { %p299_p3 = scmp.ne.s32.totalorder %s37_s13, %s298_s23  ;;  %p304_p5 = scmp.lt.s32.totalorder %s298_s23, %s298_s23 }
   0xd   :  { %p305_p6 = por %p304_p5, %p303_p4 }
   0xf   :  { %p306_p7 = pnand %p305_p6, %p299_p3 }
  0x11   :  { %309 = shalt.err (!%p306_p7)
}
  0x12   :  { %s384_s24 = smov 128   ;;  %s385_s25 = smov 8  }
  0x13   :  { %42 = dma.hbm_to_vmem [thread:$0]  %s475_s1, 256, %s37_s13, [#allocation7], %s384_s24, %s384_s24, %s385_s25  }
  0x14   :  { %s310_s30 = scalar_lea.hbm %s474_s0, 256 }
  0x15   :  { %p311_p8 = scmp.ne.s32.totalorder %s474_s0, %s310_s30  ;;  %p314_p9 = scmp.lt.u32.totalorder %s310_s30, %s474_s0 }
  0x17   :  { %p316_p10 = pnand %p314_p9, %p311_p8 }
  0x19   :  { %319 = shalt.err (!%p316_p10)
}
  0x1a   :  { %s320_s8 = scalar_lea.vmem %s410_s15, 256  ;;  %p325_p12 = scmp.lt.s32.totalorder %s410_s15, %s410_s15 }
  0x1b   :  { %p321_p11 = scmp.ne.s32.totalorder %s410_s15, %s320_s8  ;;  %p326_p13 = scmp.lt.s32.totalorder %s320_s8, %s320_s8 }
  0x1d   :  { %p327_p0 = por %p326_p13, %p325_p12 }
  0x1f   :  { %p328_p1 = pnand %p327_p0, %p321_p11 }
  0x21   :  { %331 = shalt.err (!%p328_p1)
}
  0x22   :  { %26 = dma.hbm_to_vmem [thread:$0]  %s474_s0, 256, %s410_s15, [#allocation4], %s384_s24, %s384_s24, %s385_s25  }
  0x23   :  { %s386_s10 = smov [#allocation8]   ;;  %s332_s14 = scalar_lea.hbm %s476_s2, 256 }
  0x24   :  { %s48_s11 = sshll.u32 %s386_s10, 4  ;;  %p333_p2 = scmp.ne.s32.totalorder %s476_s2, %s332_s14  ;;  %s49_s11 = int_to_ptr.vmem [resolvable:$true] %s48_s11 }
  0x25   :  { %p336_p3 = scmp.lt.u32.totalorder %s332_s14, %s476_s2 }
  0x27   :  { %p338_p4 = pnand %p336_p3, %p333_p2 }
  0x29   :  { %341 = shalt.err (!%p338_p4)
}
  0x2a   :  { %s342_s20 = scalar_lea.vmem %s49_s11, 256  ;;  %p347_p6 = scmp.lt.s32.totalorder %s49_s11, %s49_s11 }
  0x2b   :  { %p343_p5 = scmp.ne.s32.totalorder %s49_s11, %s342_s20  ;;  %p348_p7 = scmp.lt.s32.totalorder %s342_s20, %s342_s20 }
  0x2d   :  { %p349_p8 = por %p348_p7, %p347_p6 }
  0x2f   :  { %p350_p9 = pnand %p349_p8, %p343_p5 }
  0x31   :  { %353 = shalt.err (!%p350_p9)
}
  0x32   :  { %54 = dma.hbm_to_vmem [thread:$0]  %s476_s2, 256, %s49_s11, [#allocation7], %s384_s24, %s384_s24, %s385_s25  }
  0x33   :  { %376 = dma.done.wait [#allocation4], 256  }
  0x34   :  { %377 = vsyncadd [#allocation4], 4294967040 }
  0x35   :  { %378 = dma.done.wait [#allocation7], 512  }
  0x36   :  { %379 = vsyncadd [#allocation7], 4294966784  ;;  %v387_v0 = vmov 0   ;;  %v73_v1 = vld [vmem:[#allocation6] sm:$0xff]  ;;  %v89_v2 = vld [vmem:[#allocation8] sm:$0xff]  ;;  %v388_v6 = vmov 0.0   ;;  %v75_v7 = vlaneseq }
  0x37   :  { %287 = vset.pattern.permute.xlu0 %v387_v0  ;;  %v90_v3 = vld [vmem:[#allocation8 + $0x8] sm:$0xff]  ;;  %v74_v4 = vld [vmem:[#allocation6 + $0x8] sm:$0xff]  ;;  %72 = vst [vmem:[#allocation2] sm:$0x1] %v388_v6  ;;  %vm91_vm0 = vcmask 130048   ;;  %v173_v16 = vld [vmem:[#allocation3] sm:$0xff] }
  0x38   :  { %78 = vperm.xlu0 %287, %v73_v1   ;;  %v273_v5 = vpack.c.bf16 %v90_v3, %v89_v2  ;;  %v76_v8 = vand.u32 127, %v75_v7  ;;  %v188_v13 = vshrl.u32 %v75_v7, 7  ;;  %v174_v14 = vld [vmem:[#allocation3 + $0x8] sm:$0xff]  ;;  %vm229_vm4 = vcmask 1040384   ;;  %s389_s2 = smov [#allocation9]  }
  0x39   :  { %s248_s21 = sshll.u32 %s389_s2, 4  ;;  %s249_s21 = int_to_ptr.vmem [resolvable:$true] %s248_s21 }
  0x3a   :  { %274 = vmatprep.subr.bf16.mxu0 %v273_v5  ;;  %v189_v15 = vadd.s32 8, %v188_v13  ;;  %s354_s23 = scalar_lea.vmem %s249_s21, 128  ;;  %p359_p11 = scmp.lt.s32.totalorder %s249_s21, %s249_s21 }
  0x3b   :  { %276 = vmatpush3.bf16.msra.mxu0 %v273_v5  ;;  %p355_p10 = scmp.ne.s32.totalorder %s249_s21, %s354_s23  ;;  %p360_p12 = scmp.lt.s32.totalorder %s354_s23, %s354_s23 }
  0x3c   :  { %81 = vperm.xlu0 %287, %v74_v4   ;;  %vm195_vm3 = vcmp.lt.s32.totalorder %v189_v15, 10 }
  0x3d   :  { %p361_p13 = por %p360_p12, %p359_p11 }
  0x3e   :  { %v193_v30 = vld [vmem:[#allocation2] sm:$0x1] }
  0x3f   :  { %p362_p0 = pnand %p361_p13, %p355_p10 }
  0xb7   :  { %v79_v9 = vpop.permute.xlu0 %78 }
  0xb8   :  { %vm83_vm1 = vcmp.eq.s32.totalorder %v79_v9, %v76_v8 }
  0xb9   :  { %v258_v10 = vsel %vm83_vm1, 1.0, %v388_v6 }
  0xba   :  { %270 = vmatprep.mubr.msk.f32.mxu0 %vm91_vm0, %v258_v10 }
  0xbb   :  { %v82_v11 = vpop.permute.xlu0 %81 }
  0xbc   :  { %vm84_vm2 = vcmp.eq.s32.totalorder %v82_v11, %v76_v8 }
  0xbd   :  { %v259_v12 = vsel %vm84_vm2, 1.0, %v388_v6 }
  0xbe   :  { %271 = vmatmul.mubr.msk.f32.vlgmr.msra.gmra.mrb[0].mxu0 %vm91_vm0, %v259_v12 }
 0x191   :  { %v272_v17 = vpop.f32.mrb[0].mxu0 }
 0x192   :  { %v176_v18 = vsub.f32 %v272_v17, %v174_v14  ;;  %v164_v19 = vpop.f32.mrb[1].mxu0 }
 0x193   :  { %v175_v20 = vsub.f32 %v164_v19, %v173_v16 }
 0x194   :  { %v178_v21 = vmul.f32 %v176_v18, %v176_v18 }
 0x195   :  { %v177_v22 = vmul.f32 %v175_v20, %v175_v20 }
 0x196   :  { %v201_v23 = vsel %vm195_vm3, %v178_v21, 0.0 }
 0x197   :  { %v202_v24 = vadd.f32 %v201_v23, %v177_v22 }
 0x199   :  { %v203_v25 = vrot.slane %v202_v24, 4 }
 0x19b   :  { %v204_v26 = vadd.f32 %v203_v25, %v202_v24 }
 0x19d   :  { %v205_v27 = vrot.slane %v204_v26, 2 }
 0x19f   :  { %v206_v28 = vadd.f32 %v205_v27, %v204_v26 }
 0x1a1   :  { %v207_v29 = vrot.slane %v206_v28, 1 }
 0x1a3   :  { %v208_v31 = vadd.f32 %v207_v29, %v206_v28 }
 0x1a5   :  { %v209_v32 = vadd.f32 %v208_v31, %v193_v30 }
 0x1a7   :  { %210 = vst [vmem:[#allocation2] sm:$0x1] %v209_v32 }
 0x1ae   :  { %v228_v33 = vld [vmem:[#allocation2] sm:$0x1] }
 0x1af   :  { %v230_v34 = vsel %vm229_vm4, %v228_v33, 0.0 }
 0x1b0   :  { %231 = vadd.xlane.f32.xlu1 %v230_v34 }
 0x23d   :  { %v232_v35 = vpop.xlane.xlu1 %231 }
 0x23e   :  { %v233_v36 = vrot.slane %v232_v35, 4 }
 0x240   :  { %v234_v37 = vadd.f32 %v233_v36, %v232_v35 }
 0x242   :  { %v235_v38 = vrot.slane %v234_v37, 2 }
 0x244   :  { %v236_v39 = vadd.f32 %v235_v38, %v234_v37 }
 0x246   :  { %v237_v40 = vrot.slane %v236_v39, 1 }
 0x248   :  { %v238_v41 = vadd.f32 %v237_v40, %v236_v39 }
 0x24a   :  { %277 = vpush %v238_v41 }
 0x27b   :  { %s278_s22 = spop %277 }
 0x27c   :  { %v240_v42 = vstv %s278_s22 }
 0x27d   :  { %241 = vst [vmem:[#allocation9] sm:$0xff] %v240_v42 }
 0x27e   :  { %365 = shalt.err (!%p362_p0)
}
 0x27f   :  { %s366_s26 = scalar_lea.hbm %s477_s3, 128 }
 0x280   :  { %p367_p1 = scmp.ne.s32.totalorder %s477_s3, %s366_s26  ;;  %p370_p2 = scmp.lt.u32.totalorder %s366_s26, %s477_s3 }
 0x282   :  { %p372_p3 = pnand %p370_p2, %p367_p1 }
 0x284   :  { %375 = shalt.err (!%p372_p3)
}
 0x285   :  { %251 = dma.vmem_to_hbm [thread:$0]  %s249_s21, 128, %s477_s3, [#allocation5]  }
 0x286   :  { %380 = dma.done.wait [#allocation5], 128  }
 0x287   :  { %381 = vsyncadd [#allocation5], 4294967168 }
 0x288   :  { %255 = vsyncpa [#allocation4], 1 }
 0x289   :  { %256 = vsyncpa [#allocation7], 1 }
 0x28a   :  { %257 = vsyncpa [#allocation5], 1 }

</bundles_post_ra>
